<compile_context>
chip_gen: v5e
topology: v5e:2x2
jax: 0.10.0
libtpu: 0.0.40
codegen_flags: <defaults>
</compile_context>

<pallas_src>
import functools
import math

import jax
import jax.numpy as jnp
import numpy as np
from jax import lax
from jax.experimental import pallas as pl
from jax.experimental.pallas import tpu as pltpu  # noqa: F401  (future tiled variant)


def _ntxent_kernel(zi_ref, zj_ref, o_ref, *, temperature: float, mxu_dtype):
    # zi_ref / zj_ref: (B, D) in VMEM ; o_ref: (1, 1) f32 in VMEM
    zi = zi_ref[...]
    zj = zj_ref[...]
    if zi.dtype != jnp.float32:       # upcast only when inputs are lower precision
        zi = zi.astype(jnp.float32)
    if zj.dtype != jnp.float32:
        zj = zj.astype(jnp.float32)
    b = zi.shape[0]
    n = 2 * b

    # --- stack the two views once (one sublane copy) and L2-normalize ---------
    # F.normalize(p=2, eps=1e-12) fused with the 1/sqrt(T) fold:
    # rsqrt(max(sum(x^2), eps^2)) == 1 / max(||x||, eps); scaling each row by
    # sqrt(1/T) makes every MXU output below already equal to sim / T.
    z = jnp.concatenate([zi, zj], axis=0)                        # (2B, D) f32
    scale = jnp.float32(1.0 / math.sqrt(temperature))
    eps_sq = jnp.float32(1e-24)                                  # (1e-12)^2
    sumsq = jnp.sum(z * z, axis=-1, keepdims=True)               # (2B, 1)
    zn = z * (lax.rsqrt(jnp.maximum(sumsq, eps_sq)) * scale)     # rows: norm = sqrt(1/T)

    # --- positive logit per pair: cos(z_i[r], z_j[r]) / T, f32 on the VPU -----
    l_pos = jnp.sum(zn[:b] * zn[b:], axis=-1, keepdims=True)     # (B, 1)

    # --- ONE fused (2B, D) @ (D, 2B) MXU matmul (bf16 in, f32 accumulate) -----
    # Key operand materialized once as (D, 2B): single XLU transpose of the
    # stationary operand, then a standard (lhs dim 1, rhs dim 0) contraction.
    m = zn.astype(mxu_dtype)                                     # (2B, D)
    mT = jnp.transpose(zn).astype(mxu_dtype)                     # (D, 2B)
    sim = lax.dot_general(m, mT, (((1,), (0,)), ((), ())),
                          preferred_element_type=jnp.float32)    # (2B, 2B) = sim / T

    # --- mask ONLY the 2B main diagonal (self-similarity), as in the module ---
    row = lax.broadcasted_iota(jnp.int32, (n, n), 0)
    col = lax.broadcasted_iota(jnp.int32, (n, n), 1)
    neg_big = jnp.float32(-1e30)                                 # exp() underflows to exactly 0
    sim = jnp.where(row == col, neg_big, sim)

    # --- log-sum-exp with compile-time stabiliser c = 1/T (all logits <= c) ---
    c = jnp.float32(1.0 / temperature)
    rowsum = jnp.sum(jnp.exp(sim - c), axis=-1, keepdims=True)   # (2B, 1)
    l_pos2 = jnp.concatenate([l_pos, l_pos], axis=0)             # (2B, 1)
    denom = rowsum + jnp.exp(l_pos2 - c)                         # + prepended positive column
    per_row = (c - l_pos2) + jnp.log(denom)                      # -log p(label=0) per row

    o_ref[...] = jnp.sum(per_row, axis=0, keepdims=True) * jnp.float32(1.0 / n)


def ntxent_loss(z_i: jax.Array, z_j: jax.Array, temperature: float = 0.1,
                mxu_dtype=jnp.bfloat16) -> jax.Array:
    """NT-Xent loss, forward-equivalent to the (intended) PyTorch NTXentLoss.

    mxu_dtype=jnp.float32 is a DEBUG path only; bf16 is the production default
    on v5e / v6e / v7x (f32 matmul is decomposed into multiple MXU passes).
    """
    assert z_i.shape == z_j.shape and z_i.ndim == 2
    # The in-kernel LSE uses the compile-time bound c = 1/T instead of a true
    # per-row max; per review this assumption is enforced, not just documented.
    assert temperature >= 0.025, (
        "temperature too small for the compile-time LSE stabiliser c = 1/T; "
        "use a true row-max reduction for T < 0.025")
    b, d = z_i.shape
    kernel = functools.partial(_ntxent_kernel, temperature=float(temperature),
                               mxu_dtype=mxu_dtype)
    out = pl.pallas_call(
        kernel,
        out_shape=jax.ShapeDtypeStruct((1, 1), jnp.float32),
        in_specs=[pl.BlockSpec((b, d), lambda: (0, 0)),
                  pl.BlockSpec((b, d), lambda: (0, 0))],
        out_specs=pl.BlockSpec((1, 1), lambda: (0, 0)),
    )(z_i, z_j)
    return out[0, 0]


def _ntxent_reference(z_i, z_j, temperature=0.1):
    # Pure-JAX f32 reference of the same (standard) NT-Xent semantics.
    b = z_i.shape[0]
    z = jnp.concatenate([z_i, z_j], axis=0).astype(jnp.float32)
    zn = z / jnp.maximum(jnp.linalg.norm(z, axis=-1, keepdims=True), 1e-12)
    sim = jnp.matmul(zn, zn.T, precision=jax.lax.Precision.HIGHEST)
    n2b = 2 * b
    diag = jnp.eye(n2b, dtype=bool)
    sim_masked = jnp.where(diag, -jnp.inf, sim)
    idx = (jnp.arange(n2b) + b) % n2b
    pos = sim[jnp.arange(n2b), idx]
    logits = jnp.concatenate([pos[:, None], sim_masked], axis=1) / temperature
    lse = jax.scipy.special.logsumexp(logits, axis=1)
    return jnp.mean(lse - logits[:, 0])


if __name__ == "__main__":
    key = jax.random.PRNGKey(0)
    k1, k2 = jax.random.split(key)
    z_i = jax.random.normal(k1, (4, 32), dtype=jnp.float32)
    z_j = jax.random.normal(k2, (4, 32), dtype=jnp.float32)

    ref = jax.block_until_ready(_ntxent_reference(z_i, z_j, temperature=0.1))

    # Default path: bf16 MXU operands, f32 accumulation, f32 elementwise math.
    # bf16 rounding of the 1/T-scaled rows perturbs logits by O(1e-2) at T=0.1,
    # so a ~1e-2-class tolerance on the O(1) loss is expected/accepted.
    loss = jax.block_until_ready(ntxent_loss(z_i, z_j, temperature=0.1))
    assert np.allclose(np.asarray(loss), np.asarray(ref), rtol=2e-2, atol=2e-2), (
        loss, ref)

    # f32 MXU debug path: agrees closely with the f32 reference; tolerance kept
    # robust to the backend's f32-matmul pass decomposition.
    loss_f32 = jax.block_until_ready(
        ntxent_loss(z_i, z_j, temperature=0.1, mxu_dtype=jnp.float32))
    assert np.allclose(np.asarray(loss_f32), np.asarray(ref),
                       rtol=1e-2, atol=1e-2), (loss_f32, ref)

    print("KERNEL_OK")
</pallas_src>

<mosaic_0001>
module attributes {stable_mosaic.version = 11 : i64} {
  func.func @_ntxent_kernel(%arg0: memref<4x32xf32, #tpu.memory_space<vmem>>, %arg1: memref<4x32xf32, #tpu.memory_space<vmem>>, %arg2: memref<1x1xf32, #tpu.memory_space<vmem>>) attributes {dimension_semantics = [], scalar_prefetch = 0 : i64, scratch_operands = 0 : i64, tpu.core_type = #tpu.core_type<tc>} {
    %c0 = arith.constant 0 : index
    %c0_0 = arith.constant 0 : index
    %0 = vector.load %arg0[%c0, %c0_0] : memref<4x32xf32, #tpu.memory_space<vmem>>, vector<4x32xf32>
    %c0_1 = arith.constant 0 : index
    %c0_2 = arith.constant 0 : index
    %1 = vector.load %arg1[%c0_1, %c0_2] : memref<4x32xf32, #tpu.memory_space<vmem>>, vector<4x32xf32>
    %2 = tpu.concatenate %0, %1 in 0 : vector<4x32xf32>, vector<4x32xf32> -> vector<8x32xf32>
    %3 = arith.mulf %2, %2 : vector<8x32xf32>
    %cst = arith.constant dense<0.000000e+00> : vector<8xf32>
    %4 = vector.multi_reduction <add>, %3, %cst [1] : vector<8x32xf32> to vector<8xf32>
    %5 = vector.shape_cast %4 : vector<8xf32> to vector<8x1xf32>
    %cst_3 = arith.constant 1.000000e-24 : f32
    %6 = vector.broadcast %cst_3 : f32 to vector<8x1xf32>
    %7 = arith.maximumf %5, %6 : vector<8x1xf32>
    %8 = math.rsqrt %7 : vector<8x1xf32>
    %cst_4 = arith.constant 3.1622777 : f32
    %9 = vector.broadcast %cst_4 : f32 to vector<8x1xf32>
    %10 = arith.mulf %8, %9 : vector<8x1xf32>
    %11 = vector.broadcast %10 : vector<8x1xf32> to vector<8x32xf32>
    %12 = arith.mulf %2, %11 : vector<8x32xf32>
    %13 = vector.extract_strided_slice %12 {offsets = [0, 0], sizes = [4, 32], strides = [1, 1]} : vector<8x32xf32> to vector<4x32xf32>
    %14 = vector.extract_strided_slice %12 {offsets = [4, 0], sizes = [4, 32], strides = [1, 1]} : vector<8x32xf32> to vector<4x32xf32>
    %15 = arith.mulf %13, %14 : vector<4x32xf32>
    %cst_5 = arith.constant dense<0.000000e+00> : vector<4xf32>
    %16 = vector.multi_reduction <add>, %15, %cst_5 [1] : vector<4x32xf32> to vector<4xf32>
    %17 = vector.shape_cast %16 : vector<4xf32> to vector<4x1xf32>
    %18 = arith.truncf %12 : vector<8x32xf32> to vector<8x32xbf16>
    %19 = tpu.transpose %12, [1, 0] : vector<8x32xf32> -> vector<32x8xf32>
    %20 = arith.truncf %19 : vector<32x8xf32> to vector<32x8xbf16>
    %cst_6 = arith.constant dense<0.000000e+00> : vector<8x8xf32>
    %21 = tpu.matmul %18, %20, %cst_6 {dimension_numbers = #tpu.dot_dimension_numbers<[1], [0], [0], [1], [0, 0, 1, 1], [], []>} : vector<8x32xbf16>, vector<32x8xbf16>, vector<8x8xf32> -> vector<8x8xf32>
    %22 = tpu.iota {dimensions = array<i32: 0>} : vector<8x8xi32>
    %23 = tpu.iota {dimensions = array<i32: 1>} : vector<8x8xi32>
    %24 = arith.cmpi eq, %22, %23 : vector<8x8xi32>
    %cst_7 = arith.constant -1.000000e+30 : f32
    %25 = vector.broadcast %cst_7 : f32 to vector<8x8xf32>
    %26 = arith.select %24, %25, %21 : vector<8x8xi1>, vector<8x8xf32>
    %cst_8 = arith.constant 1.000000e+01 : f32
    %27 = vector.broadcast %cst_8 : f32 to vector<8x8xf32>
    %28 = arith.subf %26, %27 : vector<8x8xf32>
    %29 = math.exp %28 : vector<8x8xf32>
    %cst_9 = arith.constant dense<0.000000e+00> : vector<8xf32>
    %30 = vector.multi_reduction <add>, %29, %cst_9 [1] : vector<8x8xf32> to vector<8xf32>
    %31 = vector.shape_cast %30 : vector<8xf32> to vector<8x1xf32>
    %32 = tpu.concatenate %17, %17 in 0 : vector<4x1xf32>, vector<4x1xf32> -> vector<8x1xf32>
    %cst_10 = arith.constant 1.000000e+01 : f32
    %33 = vector.broadcast %cst_10 : f32 to vector<8x1xf32>
    %34 = arith.subf %32, %33 : vector<8x1xf32>
    %35 = math.exp %34 : vector<8x1xf32>
    %36 = arith.addf %31, %35 : vector<8x1xf32>
    %cst_11 = arith.constant 1.000000e+01 : f32
    %37 = vector.broadcast %cst_11 : f32 to vector<8x1xf32>
    %38 = arith.subf %37, %32 : vector<8x1xf32>
    %39 = math.log %36 : vector<8x1xf32>
    %40 = arith.addf %38, %39 : vector<8x1xf32>
    %cst_12 = arith.constant dense<0.000000e+00> : vector<1xf32>
    %41 = vector.multi_reduction <add>, %40, %cst_12 [0] : vector<8x1xf32> to vector<1xf32>
    %42 = vector.shape_cast %41 : vector<1xf32> to vector<1x1xf32>
    %cst_13 = arith.constant 1.250000e-01 : f32
    %43 = vector.broadcast %cst_13 : f32 to vector<1x1xf32>
    %44 = arith.mulf %42, %43 : vector<1x1xf32>
    %c0_14 = arith.constant 0 : index
    %c0_15 = arith.constant 0 : index
    %45 = vector.load %arg2[%c0_14, %c0_15] : memref<1x1xf32, #tpu.memory_space<vmem>>, vector<1x1xf32>
    tpu.vector_store %arg2[%c0_14, %c0_15], %44 {strides = array<i32>} : memref<1x1xf32, #tpu.memory_space<vmem>>, vector<1x1xf32>,
    return
  }
}

</mosaic_0001>

<bundles_post_ra>
// kernel: tpu_custom_call.1
= control target key start
LH: loop header
LB: loop body
LE: loop exit
PB: predicated region body
PF: predicated region fallthrough
CT: control target
= control target key end

     0   :  { %7 = vsyncpa [#allocation3], 0  ;;  %s303_s0 = inlined_call_operand.hbm [shape: f32[4,32], index: 0, kind: input, shape index: {}]   ;;  %s304_s1 = inlined_call_operand.hbm [shape: f32[4,32], index: 1, kind: input, shape index: {}]   ;;  %s305_s2 = inlined_call_operand.hbm [shape: f32[1,1], index: 2, kind: output, shape index: {}]  }
   0x1   :  { %8 = vsyncpa [#allocation6], 0 }
   0x2   :  { %9 = vsyncpa [#allocation4], 0  ;;  %s15_s11 = sshll.u32 %s303_s0, 4  ;;  %s272_s12 = smov [#allocation2]   ;;  %s16_s11 = int_to_ptr.hbm [resolvable:$true] %s15_s11 }
   0x3   :  { %s17_s13 = sshll.u32 %s272_s12, 4  ;;  %s26_s16 = sshll.u32 %s304_s1, 4  ;;  %s18_s13 = int_to_ptr.vmem [resolvable:$true] %s17_s13  ;;  %s27_s16 = int_to_ptr.hbm [resolvable:$true] %s26_s16 }
   0x4   :  { %20 = dma.hbm_to_vmem [thread:$0]  %s16_s11, 64, %s18_s13, [#allocation3]  }
   0x5   :  { %s273_s17 = smov [#allocation5]  }
   0x6   :  { %s28_s18 = sshll.u32 %s273_s17, 4  ;;  %s29_s18 = int_to_ptr.vmem [resolvable:$true] %s28_s18 }
   0x7   :  { %31 = dma.hbm_to_vmem [thread:$0]  %s27_s16, 64, %s29_s18, [#allocation6]  }
   0x8   :  { %266 = dma.done.wait [#allocation3], 64  }
   0x9   :  { %267 = vsyncadd [#allocation3], 4294967232 }
   0xa   :  { %268 = dma.done.wait [#allocation6], 64  }
   0xb   :  { %269 = vsyncadd [#allocation6], 4294967232  ;;  %v41_v0 = vld [vmem:[#allocation2] sm:$0xf]  ;;  %v42_v1 = vld [vmem:[#allocation5] sm:$0xf]  ;;  %v125_v27 = vlaneseq }
   0xc   :  { %vm46_vm0 = vcmask 1043456   ;;  %v44_v2 = vrot.slane %v42_v1, 4  ;;  %vm49_vm1 = vcmask 261120   ;;  %vm70_vm5 = vcmask 257024   ;;  %s274_s0 = smov [#allocation7]   ;;  %s168_s21 = sshll.u32 %s305_s2, 4  ;;  %s169_s21 = int_to_ptr.hbm [resolvable:$true] %s168_s21 }
   0xd   :  { %v126_v28 = vshrl.u32 %v125_v27, 7  ;;  %v128_v29 = vand.u32 127, %v125_v27  ;;  %vm134_vm7 = vcmask 64512   ;;  %vm150_vm8 = vcmask 7168   ;;  %s166_s1 = sshll.u32 %s274_s0, 4  ;;  %s167_s1 = int_to_ptr.vmem [resolvable:$true] %s166_s1 }
   0xe   :  { %v47_v3 = vsel %vm46_vm0, %v41_v0, %v44_v2  ;;  %vm159_vm9 = vcmask 0  }
   0xf   :  { %v48_v4 = vmul.f32 %v47_v3, %v47_v3  ;;  %vm129_vm6 = vcmp.eq.s32.totalorder %v126_v28, %v128_v29 }
  0x11   :  { %v50_v5 = vsel %vm49_vm1, %v48_v4, 0.0 }
  0x12   :  { %51 = vadd.xlane.f32.xlu0 %v50_v5 }
  0x85   :  { %v52_v6 = vpop.xlane.xlu0 %51 }
  0x86   :  { %v53_v7 = vmax.f32 %v52_v6, 1e-24 }
  0x88   :  { %186 = vrsqrt.f32 %v53_v7  ;;  %vm60_vm3 = vweird.f32 %v53_v7 }
  0x8e   :  { %v187_v8 = vpop.eup %186 }
  0x8f   :  { %v55_v9 = vmul.f32 %v187_v8, %v53_v7  ;;  %vm61_vm2 = vweird.f32 %v187_v8 }
  0x90   :  { %vm62_vm4 = vmor %vm60_vm3, %vm61_vm2 }
  0x91   :  { %v56_v10 = vmul.f32 %v187_v8, %v55_v9 }
  0x93   :  { %v57_v11 = vmul.f32 0.5, %v56_v10 }
  0x95   :  { %v58_v12 = vsub.f32 1.5, %v57_v11 }
  0x97   :  { %v59_v13 = vmul.f32 %v187_v8, %v58_v12 }
  0x99   :  { %v63_v14 = vsel %vm62_vm4, %v187_v8, %v59_v13 }
  0x9a   :  { %v64_v15 = vmul.f32 3.1622777, %v63_v14 }
  0x9c   :  { %v65_v16 = vmul.f32 %v64_v15, %v47_v3 }
  0x9e   :  { %75 = vxpose.xlu0.b32.start.end [1/1] (short) (narrow) %v65_v16, 32  ;;  %v67_v17 = vrot.slane %v65_v16, 4  ;;  %v74_v26 = vpack.c.bf16 %v65_v16, %v65_v16 }
  0xa0   :  { %v69_v18 = vmul.f32 %v67_v17, %v65_v16 }
  0xa2   :  { %v71_v19 = vsel %vm70_vm5, %v69_v18, 0.0 }
  0xa3   :  { %72 = vadd.xlane.f32.xlu1 %v71_v19 }
 0x116   :  { %v73_v37 = vpop.xlane.xlu1 %72 }
 0x117   :  { %v139_v38 = vrot.slane %v73_v37, 4 }
 0x119   :  { %v141_v39 = vsel %vm46_vm0, %v73_v37, %v139_v38 }
 0x11a   :  { %v181_v40 = vadd.f32 -10.0, %v141_v39  ;;  %v146_v46 = vsub.f32 10.0, %v141_v39 }
 0x11c   :  { %v143_v41 = vmul.f32 1.442695, %v181_v40 }
 0x142   :  { %v91_v20 = vpop.trf.xlu0 }
 0x14a   :  { %v92_v21 = vpop.trf.xlu0 }
 0x14b   :  { %v107_v25 = vpack.c.bf16 %v92_v21, %v91_v20 }
 0x152   :  { %v93_v22 = vpop.trf.xlu0 }
 0x15a   :  { %v94_v23 = vpop.trf.xlu0 }
 0x15b   :  { %v108_v24 = vpack.c.bf16 %v94_v23, %v93_v22 }
 0x15d   :  { %118 = vmatpush.bf16.msra.mxu0 %v108_v24 }
 0x161   :  { %119 = vmatpush.bf16.msra.mxu0 %v107_v25 }
 0x164   :  { %179 = vmatmul.msk.bf16.vlgmr.msra.gmra.mxu0 %vm49_vm1, %v74_v26 }
 0x1e1   :  { %v121_v30 = vpop.f32.mrf.mxu0 }
 0x1e2   :  { %v130_v31 = vsel %vm129_vm6, -1e+30, %v121_v30 }
 0x1e3   :  { %v180_v32 = vadd.f32 -10.0, %v130_v31 }
 0x1e5   :  { %v132_v33 = vmul.f32 1.442695, %v180_v32 }
 0x1e7   :  { %188 = vpow2.f32 %v132_v33 }
 0x1e8   :  { %190 = vpow2.f32 %v143_v41 }
 0x1e9   :  { %v123_v34 = vpop.f32.mrf.mxu0 }
 0x1ed   :  { %v189_v35 = vpop.eup %188 }
 0x1ee   :  { %v135_v36 = vsel %vm134_vm7, %v189_v35, 0.0  ;;  %v191_v42 = vpop.eup %190 }
 0x1ef   :  { %136 = vadd.xlane.f32.xlu1 %v135_v36 }
 0x262   :  { %v137_v43 = vpop.xlane.xlu1 %136 }
 0x263   :  { %v145_v44 = vadd.f32 %v191_v42, %v137_v43 }
 0x265   :  { %192 = vlog2.f32 %v145_v44 }
 0x26b   :  { %v193_v45 = vpop.eup %192 }
 0x26c   :  { %v148_v47 = vmul.f32 0.6931472, %v193_v45 }
 0x26e   :  { %v149_v48 = vadd.f32 %v148_v47, %v146_v46 }
 0x270   :  { %v151_v49 = vsel %vm150_vm8, %v149_v48, 0.0 }
 0x271   :  { %v152_v50 = vrot.slane %v151_v49, 4 }
 0x273   :  { %v153_v51 = vadd.f32 %v152_v50, %v151_v49 }
 0x275   :  { %v154_v52 = vrot.slane %v153_v51, 2 }
 0x277   :  { %v155_v53 = vadd.f32 %v154_v52, %v153_v51 }
 0x279   :  { %v156_v54 = vrot.slane %v155_v53, 1 }
 0x27b   :  { %v157_v55 = vadd.f32 %v156_v54, %v155_v53 }
 0x27d   :  { %v158_v56 = vmul.f32 0.125, %v157_v55 }
 0x27f   :  { %160 = vst.msk [vmem:[#allocation7] sm:$0x1] %vm159_vm9, %v158_v56 }
 0x280   :  { %171 = dma.vmem_to_hbm [thread:$0]  %s167_s1, 16, %s169_s21, [#allocation4]  }
 0x281   :  { %270 = dma.done.wait [#allocation4], 16  }
 0x282   :  { %271 = vsyncadd [#allocation4], 4294967280 }
 0x283   :  { %176 = vsyncpa [#allocation3], 1 }
 0x284   :  { %177 = vsyncpa [#allocation6], 1 }
 0x285   :  { %178 = vsyncpa [#allocation4], 1 }

</bundles_post_ra>
